<compile_context>
chip_gen: v7x
topology: tpu7x:2x2x1
jax: 0.10.0
libtpu: 0.0.40
codegen_flags: <defaults>
</compile_context>

<pallas_src>
import functools

import jax
import jax.numpy as jnp
from jax import lax
from jax.experimental import pallas as pl
from jax.experimental.pallas import tpu as pltpu

_LANES = 128
_PAIRS = _LANES // 2          # batch elements per 128-lane row
_CHUNK = 8                    # sublane rows per inner step (one f32 vreg per value)

# Offsets into the packed 128-float parameter slab (PyTorch (out, in) weight order).
_W1, _B1, _W2, _B2, _W3, _B3 = 0, 16, 24, 88, 96, 112
_N_PARAMS = 114


def _roll_probe_kernel(x_ref, o_ref):
    o_ref[...] = pltpu.roll(x_ref[...], 1, 1)


@functools.cache
def _shift_down_one():
    """Trace-time calibration: the pltpu.roll shift that moves lane l -> lane l+1.

    Cheap (one tiny compile, cached); guarantees the in-pair swap direction is correct
    regardless of the rotate sign convention of the installed Mosaic/JAX version.
    """
    x = jnp.broadcast_to(lax.iota(jnp.float32, _LANES), (_CHUNK, _LANES))
    y = pl.pallas_call(
        _roll_probe_kernel,
        out_shape=jax.ShapeDtypeStruct((_CHUNK, _LANES), jnp.float32),
    )(x)
    # jnp.roll convention: y[0, 1] == x[0, 0] == 0.0; otherwise the direction is flipped.
    return 1 if float(y[0, 1]) == 0.0 else _LANES - 1


def _mlp_kernel(p_ref, x_ref, out_ref, *, shift_dn):
    """p_ref: (128,) f32 SMEM slab.  x_ref/out_ref: (TR, 128) f32 lane-interleaved tiles."""
    shift_up = _LANES - shift_dn

    # ---- hoisted once per grid step: parameter scalars (SMEM) + lane-parity mask ------
    w1 = [[p_ref[_W1 + 2 * j + i] for i in range(2)] for j in range(8)]
    b1 = [p_ref[_B1 + j] for j in range(8)]
    w2 = [[p_ref[_W2 + 8 * i + j] for j in range(8)] for i in range(8)]
    b2 = [p_ref[_B2 + i] for i in range(8)]
    w3 = [[p_ref[_W3 + 8 * i + j] for j in range(8)] for i in range(2)]
    b3 = [p_ref[_B3 + i] for i in range(2)]

    lane = lax.broadcasted_iota(jnp.int32, (_CHUNK, _LANES), 1)
    even = (lane % 2) == 0      # lane 2k holds feature 0 (s), lane 2k+1 holds feature 1 (o)

    n_chunks = x_ref.shape[0] // _CHUNK   # static

    def chunk(c, carry):
        r0 = pl.multiple_of(c * _CHUNK, _CHUNK)
        x = x_ref[pl.ds(r0, _CHUNK), :]                       # (8, 128) interleaved (s, o)

        # In-pair swap (XLU rotates): give every lane both features of its batch element.
        xs = jnp.where(even, x, pltpu.roll(x, shift_dn, 1))   # s_k in lanes 2k and 2k+1
        xo = jnp.where(even, pltpu.roll(x, shift_up, 1), x)   # o_k in lanes 2k and 2k+1

        # Layer 1: 2 -> 8 + ReLU (VPU scalar*vector).
        h = [jnp.maximum(w1[j][0] * xs + w1[j][1] * xo + b1[j], 0.0) for j in range(8)]

        # Layer 2: 8 -> 8 + ReLU.
        g = []
        for i in range(8):
            acc = w2[i][0] * h[0]
            for j in range(1, 8):
                acc = acc + w2[i][j] * h[j]
            g.append(jnp.maximum(acc + b2[i], 0.0))

        # Layer 3: 8 -> 2 logits.
        logit = []
        for i in range(2):
            acc = w3[i][0] * g[0]
            for j in range(1, 8):
                acc = acc + w3[i][j] * g[j]
            logit.append(acc + b3[i])

        # Re-interleave (lane 2k := logit0, lane 2k+1 := logit1) -> unmasked 128-lane store,
        # which is exactly the row-major (B, 2) flat layout.
        out_ref[pl.ds(r0, _CHUNK), :] = jnp.where(even, logit[0], logit[1])
        return carry

    lax.fori_loop(0, n_chunks, chunk, 0)


def _round_up(n, m):
    return (n + m - 1) // m * m


def _pack_params(params):
    w1, b1, w2, b2, w3, b3 = params
    flat = jnp.concatenate([w1.reshape(-1), b1.reshape(-1), w2.reshape(-1),
                            b2.reshape(-1), w3.reshape(-1), b3.reshape(-1)])
    assert flat.shape[0] == _N_PARAMS
    return jnp.pad(flat, (0, _LANES - _N_PARAMS)).astype(jnp.float32)


def pig_game_nn_forward(x, params, *, block_rows=2048):
    """x: (B, ...) with prod(...) == 2 (pig-game state).  Returns (B, 2) f32 logits."""
    batch = x.shape[0]
    xf = x.reshape(batch, -1).astype(jnp.float32)              # nn.Flatten
    assert xf.shape[1] == 2, "PigGameNN expects 2 input features after Flatten"

    # Free row-major view: (Bp, 2) == (Bp/64, 128) lane-interleaved.
    rows_needed = pl.cdiv(batch, _PAIRS)
    tile_rows = min(block_rows, _round_up(rows_needed, _CHUNK))   # clamp for small batches
    rows = _round_up(rows_needed, tile_rows)
    bp = rows * _PAIRS
    if bp != batch:
        xf = jnp.pad(xf, ((0, bp - batch), (0, 0)))
    x_lanes = xf.reshape(rows, _LANES)                          # free (bitcast) reshape

    n_blocks = rows // tile_rows
    kernel = functools.partial(_mlp_kernel, shift_dn=_shift_down_one())

    out_lanes = pl.pallas_call(
        kernel,
        out_shape=jax.ShapeDtypeStruct((rows, _LANES), jnp.float32),
        grid_spec=pltpu.PrefetchScalarGridSpec(
            num_scalar_prefetch=0,
            grid=(n_blocks,),
            in_specs=[
                pl.BlockSpec(memory_space=pltpu.MemorySpace.SMEM),    # packed param slab
                pl.BlockSpec((tile_rows, _LANES), lambda i: (i, 0)),  # streamed x tile
            ],
            out_specs=pl.BlockSpec((tile_rows, _LANES), lambda i: (i, 0)),
        ),
        compiler_params=pltpu.CompilerParams(
            dimension_semantics=("parallel",),       # megacore sharding where available
            vmem_limit_bytes=32 * 1024 * 1024,       # explicit; safe on v5e/v6e/v7x
        ),
        cost_estimate=pl.CostEstimate(
            flops=192 * bp,                          # ~192 MAC-flops per row
            transcendentals=0,
            bytes_accessed=16 * bp + 4 * _LANES,     # 8B in + 8B out per row + params
        ),
    )(_pack_params(params), x_lanes)

    # Free reshape back to (Bp, 2); the slice only copies when the batch was padded.
    return out_lanes.reshape(bp, 2)[:batch]


def init_params(key):
    """PyTorch nn.Linear default init.  Weights (out, in), biases (out,)."""
    dims = [(2, 8), (8, 8), (8, 2)]                  # (fan_in, fan_out)
    params = []
    for fan_in, fan_out in dims:
        key, kw, kb = jax.random.split(key, 3)
        bound = 1.0 / (fan_in ** 0.5)
        w = jax.random.uniform(kw, (fan_out, fan_in), jnp.float32, -bound, bound)
        b = jax.random.uniform(kb, (fan_out,), jnp.float32, -bound, bound)
        params.extend([w, b])
    return tuple(params)


def reference_forward(x, params):
    """Pure-JAX reference (PyTorch semantics: y = x @ W.T + b)."""
    w1, b1, w2, b2, w3, b3 = params
    xf = x.reshape(x.shape[0], -1)
    h = jnp.maximum(xf @ w1.T + b1, 0.0)
    h = jnp.maximum(h @ w2.T + b2, 0.0)
    return h @ w3.T + b3


if __name__ == "__main__":
    key = jax.random.PRNGKey(0)
    key, kx = jax.random.split(key)

    # Pig-game state: (score_self, score_opponent) per batch row -> (B, 2).
    batch = 16
    x = jax.random.uniform(kx, (batch, 2), jnp.float32, 0.0, 100.0)

    params = init_params(key)

    logits = jax.block_until_ready(pig_game_nn_forward(x, params))
    ref = reference_forward(x, params)

    assert logits.shape == (batch, 2)
    assert jnp.allclose(logits, ref, atol=1e-2, rtol=1e-4), "mismatch vs reference"

    print("KERNEL_OK")
</pallas_src>

<mosaic_0001>
module attributes {stable_mosaic.version = 11 : i64} {
  func.func @_roll_probe_kernel(%arg0: memref<8x128xf32, #tpu.memory_space<vmem>>, %arg1: memref<8x128xf32, #tpu.memory_space<vmem>>) attributes {dimension_semantics = [], scalar_prefetch = 0 : i64, scratch_operands = 0 : i64, tpu.core_type = #tpu.core_type<tc>} {
    %c0 = arith.constant 0 : index
    %c0_0 = arith.constant 0 : index
    %0 = vector.load %arg0[%c0, %c0_0] : memref<8x128xf32, #tpu.memory_space<vmem>>, vector<8x128xf32>
    %c1_i32 = arith.constant 1 : i32
    %1 = tpu.dynamic_rotate %0 by %c1_i32 dim 1 : vector<8x128xf32>, i32 -> vector<8x128xf32>
    %c0_1 = arith.constant 0 : index
    %c0_2 = arith.constant 0 : index
    %2 = vector.load %arg1[%c0_1, %c0_2] : memref<8x128xf32, #tpu.memory_space<vmem>>, vector<8x128xf32>
    tpu.vector_store %arg1[%c0_1, %c0_2], %1 {strides = array<i32>} : memref<8x128xf32, #tpu.memory_space<vmem>>, vector<8x128xf32>,
    return
  }
}

</mosaic_0001>

<bundles_post_ra>
// kernel: tpu_custom_call.1
= control target key start
LH: loop header
LB: loop body
LE: loop exit
PB: predicated region body
PF: predicated region fallthrough
CT: control target
= control target key end

     0   :  { %6 = vsyncpa [#allocation3], 0  ;;  %s128_s0 = inlined_call_operand.hbm [shape: f32[8,128], index: 0, kind: input, shape index: {}]   ;;  %s129_s1 = inlined_call_operand.hbm [shape: f32[8,128], index: 1, kind: output, shape index: {}]  }
   0x1   :  { %7 = vsyncpa [#allocation4], 0  ;;  %s91_s6 = smov [#allocation2]   ;;  %s43_s10 = scalar_lea.hbm %s128_s0, 128 }
   0x2   :  { %s14_s7 = sshll.u32 %s91_s6, 4  ;;  %p44_p0 = scmp.ne.s32.totalorder %s128_s0, %s43_s10  ;;  %s15_s7 = int_to_ptr.vmem [resolvable:$true] %s14_s7 }
   0x3   :  { %p47_p1 = scmp.lt.u32.totalorder %s43_s10, %s128_s0 }
   0x5   :  { %p49_p2 = pnand %p47_p1, %p44_p0 }
   0x7   :  { %52 = shalt.err (!%p49_p2)
}
   0x8   :  { %s53_s15 = scalar_lea.vmem %s15_s7, 128  ;;  %p58_p4 = scmp.lt.s32.totalorder %s15_s7, %s15_s7 }
   0x9   :  { %p54_p3 = scmp.ne.s32.totalorder %s15_s7, %s53_s15  ;;  %p59_p5 = scmp.lt.s32.totalorder %s53_s15, %s53_s15 }
   0xb   :  { %p60_p6 = por %p59_p5, %p58_p4 }
   0xd   :  { %p61_p7 = pnand %p60_p6, %p54_p3 }
   0xf   :  { %64 = shalt.err (!%p61_p7)
}
  0x10   :  { %17 = dma.hbm_to_vmem [thread:$0]  %s128_s0, 128, %s15_s7, [#allocation3]  }
  0x11   :  { %87 = dma.done.wait [#allocation3], 128  }
  0x12   :  { %88 = vsyncadd [#allocation3], 4294967168  ;;  %v21_v0 = vld [vmem:[#allocation2] sm:$0xff]  ;;  %s92_s18 = smov 1   ;;  %s93_s19 = smov [#allocation5]  }
  0x13   :  { %22 = vrot.lane.b32.xlu0 %v21_v0, %s92_s18  ;;  %s31_s20 = sshll.u32 %s93_s19, 4  ;;  %s32_s20 = int_to_ptr.vmem [resolvable:$true] %s31_s20 }
  0x14   :  { %s65_s21 = scalar_lea.vmem %s32_s20, 128  ;;  %p70_p9 = scmp.lt.s32.totalorder %s32_s20, %s32_s20 }
  0x15   :  { %p66_p8 = scmp.ne.s32.totalorder %s32_s20, %s65_s21  ;;  %p71_p10 = scmp.lt.s32.totalorder %s65_s21, %s65_s21 }
  0x17   :  { %p72_p11 = por %p71_p10, %p70_p9 }
  0x19   :  { %p73_p12 = pnand %p72_p11, %p66_p8 }
  0x85   :  { %v23_v1 = vpop.permute.xlu0 %22 }
  0x86   :  { %24 = vst [vmem:[#allocation5] sm:$0xff] %v23_v1 }
  0x87   :  { %76 = shalt.err (!%p73_p12)
}
  0x88   :  { %s77_s0 = scalar_lea.hbm %s129_s1, 128 }
  0x89   :  { %p78_p13 = scmp.ne.s32.totalorder %s129_s1, %s77_s0  ;;  %p81_p0 = scmp.lt.u32.totalorder %s77_s0, %s129_s1 }
  0x8b   :  { %p83_p1 = pnand %p81_p0, %p78_p13 }
  0x8d   :  { %86 = shalt.err (!%p83_p1)
}
  0x8e   :  { %34 = dma.vmem_to_hbm [thread:$0]  %s32_s20, 128, %s129_s1, [#allocation4]  }
  0x8f   :  { %89 = dma.done.wait [#allocation4], 128  }
  0x90   :  { %90 = vsyncadd [#allocation4], 4294967168 }
  0x91   :  { %38 = vsyncpa [#allocation3], 1 }
  0x92   :  { %39 = vsyncpa [#allocation4], 1 }

</bundles_post_ra>
